<compile_context>
chip_gen: v6e
topology: v6e:2x2x1
jax: 0.10.0
libtpu: 0.0.40
codegen_flags: <defaults>
</compile_context>

<pallas_src>
import functools

import jax
import jax.numpy as jnp
from jax.experimental import pallas as pl
from jax.experimental.pallas import tpu as pltpu


def _round_up(x, m):
    return ((x + m - 1) // m) * m


def _cdiv(a, b):
    return -(-a // b)


def _label_smoothing_kernel(logits_ref, targets_ref, out_ref, *,
                            smoothing, num_classes, batch):
    # logits_ref : (C, TB) f32/bf16  -- batch on the lane axis.
    # targets_ref: (1, TB) int32.
    # out_ref    : (1, 128) f32      -- this grid step's partial sum (lane 0).
    x = logits_ref[...].astype(jnp.float32)                 # (C, TB)
    t = targets_ref[...]                                    # (1, TB)
    tb = x.shape[1]

    # Numerically stable log-softmax pieces along the class (sublane) axis.
    m = jnp.max(x, axis=0, keepdims=True)                   # (1, TB)
    shifted = x - m                                          # (C, TB)
    lse = jnp.log(jnp.sum(jnp.exp(shifted), axis=0, keepdims=True))   # (1, TB)

    # sum_c log_probs = sum_c shifted - C * lse   (no full log_probs tile).
    sum_shifted = jnp.sum(shifted, axis=0, keepdims=True)    # (1, TB)
    sum_logp = sum_shifted - jnp.float32(num_classes) * lse  # (1, TB)

    # log_probs[target]: iota-compare select + sublane reduce (one pass).
    class_ids = jax.lax.broadcasted_iota(jnp.int32, x.shape, 0)        # (C, TB)
    tgt_shifted = jnp.sum(
        jnp.where(class_ids == t, shifted, jnp.float32(0.0)),
        axis=0, keepdims=True)                                         # (1, TB)
    tgt_logp = tgt_shifted - lse                                       # (1, TB)

    per_col = (-(1.0 - smoothing) * tgt_logp
               - (smoothing / num_classes) * sum_logp)                 # (1, TB)

    # Mask columns whose GLOBAL sample index is >= batch (partial last block:
    # those lanes hold unspecified data, possibly NaN/Inf -> where-select, no mul).
    col = pl.program_id(0) * tb + jax.lax.broadcasted_iota(jnp.int32, (1, tb), 1)
    partial = jnp.sum(jnp.where(col < batch, per_col, jnp.float32(0.0)))

    # Write the scalar partial into lane 0 of this step's 128-wide output chunk
    # (keeps the out block (1, 128): lane-aligned, disjoint per step -> fully
    # "parallel" grid, no accumulator carry).
    lane = jax.lax.broadcasted_iota(jnp.int32, (1, 128), 1)
    out_ref[...] = jnp.where(lane == 0, partial, jnp.float32(0.0))


def label_smoothing_loss(logits, targets, *, smoothing=0.1, num_classes=4,
                         block_b=4096):
    B, C = logits.shape
    assert C == num_classes
    assert block_b % 128 == 0

    # Batch tile: as large as block_b allows (per-step overhead / DMA bound),
    # but keep >= 2 grid steps when B > 128 so v7x can shard the "parallel"
    # axis across both TensorCores.
    tb = min(block_b, _round_up(B, 128))
    if B > 128 and _cdiv(B, tb) < 2:
        tb = _round_up(_cdiv(B, 2), 128)
    n_blocks = _cdiv(B, tb)

    # Layout plumbing: batch on the lane axis. No explicit padding -- partial
    # last block is handled by Pallas + in-kernel masking.
    logits_t = jnp.transpose(logits)                          # (C, B)
    targets_2d = targets.astype(jnp.int32).reshape(1, B)      # (1, B) (free reshape)

    kernel = functools.partial(
        _label_smoothing_kernel,
        smoothing=smoothing, num_classes=num_classes, batch=B)

    partials = pl.pallas_call(
        kernel,
        out_shape=jax.ShapeDtypeStruct((1, 128 * n_blocks), jnp.float32),
        grid=(n_blocks,),
        in_specs=[
            pl.BlockSpec((C, tb), lambda i: (0, i)),   # logits tile (batch on lanes)
            pl.BlockSpec((1, tb), lambda i: (0, i)),   # targets tile
        ],
        out_specs=pl.BlockSpec((1, 128), lambda i: (0, i)),
        compiler_params=pltpu.CompilerParams(
            dimension_semantics=("parallel",),
        ),
    )(logits_t, targets_2d)

    # Tiny final reduction (n_blocks scalars) + mean over the TRUE batch size.
    return jnp.sum(partials) / B


def _reference(logits, targets, smoothing=0.1, num_classes=4):
    log_probs = jax.nn.log_softmax(logits.astype(jnp.float32), axis=1)
    one_hot = jax.nn.one_hot(targets, num_classes, dtype=jnp.float32)
    smoothed = one_hot * (1.0 - smoothing) + smoothing / num_classes
    return jnp.mean(jnp.sum(-smoothed * log_probs, axis=1))


if __name__ == "__main__":
    key = jax.random.PRNGKey(0)
    k1, k2 = jax.random.split(key)

    # B=1000: not a multiple of the tile -> exercises the partial last block,
    # the in-kernel validity mask, and the 2-step parallel grid.
    batch, num_classes, smoothing = 1000, 4, 0.1
    logits = jax.random.normal(k1, (batch, num_classes), dtype=jnp.float32)
    targets = jax.random.randint(k2, (batch,), 0, num_classes, dtype=jnp.int32)

    # f32 path
    loss = label_smoothing_loss(
        logits, targets, smoothing=smoothing, num_classes=num_classes)
    loss = jax.block_until_ready(loss)
    ref = _reference(logits, targets, smoothing, num_classes)
    assert jnp.allclose(loss, ref, atol=1e-5, rtol=1e-5), (loss, ref)

    # bf16-input path (halves logits HBM read; kernel upcasts to f32 internally)
    logits_bf16 = logits.astype(jnp.bfloat16)
    loss_bf = label_smoothing_loss(
        logits_bf16, targets, smoothing=smoothing, num_classes=num_classes)
    loss_bf = jax.block_until_ready(loss_bf)
    ref_bf = _reference(logits_bf16.astype(jnp.float32), targets, smoothing, num_classes)
    assert jnp.allclose(loss_bf, ref_bf, atol=1e-4, rtol=1e-4), (loss_bf, ref_bf)

    print("KERNEL_OK")
</pallas_src>

<mosaic_0001>
module attributes {stable_mosaic.version = 11 : i64} {
  func.func @_label_smoothing_kernel(%arg0: i32, %arg1: memref<4x512xf32, #tpu.memory_space<vmem>>, %arg2: memref<1x512xi32, #tpu.memory_space<vmem>>, %arg3: memref<1x128xf32, #tpu.memory_space<vmem>>) attributes {dimension_semantics = [#tpu.dimension_semantics<parallel>], iteration_bounds = array<i64: 2>, scalar_prefetch = 0 : i64, scratch_operands = 0 : i64, tpu.core_type = #tpu.core_type<tc>, window_params = [{transform_indices = @transform_0, window_bounds = array<i64: 4, 512>}, {transform_indices = @transform_1, window_bounds = array<i64: 1, 512>}, {transform_indices = @transform_2, window_bounds = array<i64: 1, 128>}]} {
    %c0 = arith.constant 0 : index
    %c0_0 = arith.constant 0 : index
    %0 = vector.load %arg1[%c0, %c0_0] : memref<4x512xf32, #tpu.memory_space<vmem>>, vector<4x512xf32>
    %c0_1 = arith.constant 0 : index
    %c0_2 = arith.constant 0 : index
    %1 = vector.load %arg2[%c0_1, %c0_2] : memref<1x512xi32, #tpu.memory_space<vmem>>, vector<1x512xi32>
    %cst = arith.constant dense<0xFF800000> : vector<512xf32>
    %2 = vector.multi_reduction <maximumf>, %0, %cst [0] : vector<4x512xf32> to vector<512xf32>
    %3 = vector.shape_cast %2 : vector<512xf32> to vector<1x512xf32>
    %4 = vector.broadcast %3 : vector<1x512xf32> to vector<4x512xf32>
    %5 = arith.subf %0, %4 : vector<4x512xf32>
    %6 = math.exp %5 : vector<4x512xf32>
    %cst_3 = arith.constant dense<0.000000e+00> : vector<512xf32>
    %7 = vector.multi_reduction <add>, %6, %cst_3 [0] : vector<4x512xf32> to vector<512xf32>
    %8 = vector.shape_cast %7 : vector<512xf32> to vector<1x512xf32>
    %9 = math.log %8 : vector<1x512xf32>
    %cst_4 = arith.constant dense<0.000000e+00> : vector<512xf32>
    %10 = vector.multi_reduction <add>, %5, %cst_4 [0] : vector<4x512xf32> to vector<512xf32>
    %11 = vector.shape_cast %10 : vector<512xf32> to vector<1x512xf32>
    %cst_5 = arith.constant 4.000000e+00 : f32
    %12 = vector.broadcast %cst_5 : f32 to vector<1x512xf32>
    %13 = arith.mulf %12, %9 : vector<1x512xf32>
    %14 = arith.subf %11, %13 : vector<1x512xf32>
    %15 = tpu.iota {dimensions = array<i32: 0>} : vector<4x512xi32>
    %16 = vector.broadcast %1 : vector<1x512xi32> to vector<4x512xi32>
    %17 = arith.cmpi eq, %15, %16 : vector<4x512xi32>
    %cst_6 = arith.constant 0.000000e+00 : f32
    %18 = vector.broadcast %cst_6 : f32 to vector<4x512xf32>
    %19 = arith.select %17, %5, %18 : vector<4x512xi1>, vector<4x512xf32>
    %cst_7 = arith.constant dense<0.000000e+00> : vector<512xf32>
    %20 = vector.multi_reduction <add>, %19, %cst_7 [0] : vector<4x512xf32> to vector<512xf32>
    %21 = vector.shape_cast %20 : vector<512xf32> to vector<1x512xf32>
    %22 = arith.subf %21, %9 : vector<1x512xf32>
    %cst_8 = arith.constant -0.899999976 : f32
    %23 = vector.broadcast %cst_8 : f32 to vector<1x512xf32>
    %24 = arith.mulf %23, %22 : vector<1x512xf32>
    %cst_9 = arith.constant 2.500000e-02 : f32
    %25 = vector.broadcast %cst_9 : f32 to vector<1x512xf32>
    %26 = arith.mulf %25, %14 : vector<1x512xf32>
    %27 = arith.subf %24, %26 : vector<1x512xf32>
    %c512_i32 = arith.constant 512 : i32
    %28 = arith.muli %arg0, %c512_i32 : i32
    %29 = tpu.iota {dimensions = array<i32: 1>} : vector<1x512xi32>
    %30 = vector.broadcast %28 : i32 to vector<1x512xi32>
    %31 = arith.addi %30, %29 : vector<1x512xi32>
    %c1000_i32 = arith.constant 1000 : i32
    %32 = vector.broadcast %c1000_i32 : i32 to vector<1x512xi32>
    %33 = arith.cmpi slt, %31, %32 : vector<1x512xi32>
    %cst_10 = arith.constant 0.000000e+00 : f32
    %34 = vector.broadcast %cst_10 : f32 to vector<1x512xf32>
    %35 = arith.select %33, %27, %34 : vector<1x512xi1>, vector<1x512xf32>
    %36 = vector.shape_cast %35 : vector<1x512xf32> to vector<1x1x512xf32>
    %cst_11 = arith.constant dense<0.000000e+00> : vector<1xf32>
    %37 = vector.multi_reduction <add>, %36, %cst_11 [1, 2] : vector<1x1x512xf32> to vector<1xf32>
    %38 = vector.shape_cast %37 : vector<1xf32> to vector<1x1x1xf32>
    %39 = vector.extract %38[0, 0, 0] : f32 from vector<1x1x1xf32>
    %40 = tpu.iota {dimensions = array<i32: 1>} : vector<1x128xi32>
    %c0_i32 = arith.constant 0 : i32
    %41 = vector.broadcast %c0_i32 : i32 to vector<1x128xi32>
    %42 = arith.cmpi eq, %40, %41 : vector<1x128xi32>
    %cst_12 = arith.constant 0.000000e+00 : f32
    %43 = vector.broadcast %39 : f32 to vector<1x128xf32>
    %44 = vector.broadcast %cst_12 : f32 to vector<1x128xf32>
    %45 = arith.select %42, %43, %44 : vector<1x128xi1>, vector<1x128xf32>
    %c0_13 = arith.constant 0 : index
    %c0_14 = arith.constant 0 : index
    %46 = vector.load %arg3[%c0_13, %c0_14] : memref<1x128xf32, #tpu.memory_space<vmem>>, vector<1x128xf32>
    tpu.vector_store %arg3[%c0_13, %c0_14], %45 {strides = array<i32>} : memref<1x128xf32, #tpu.memory_space<vmem>>, vector<1x128xf32>,
    return
  }
  func.func @transform_0(%arg0: i32) -> (i32, i32) {
    %c0_i32 = arith.constant 0 : i32
    %c0_i32_0 = arith.constant 0 : i32
    return %c0_i32, %arg0 : i32, i32
  }
  func.func @transform_1(%arg0: i32) -> (i32, i32) {
    %c0_i32 = arith.constant 0 : i32
    %c0_i32_0 = arith.constant 0 : i32
    return %c0_i32, %arg0 : i32, i32
  }
  func.func @transform_2(%arg0: i32) -> (i32, i32) {
    %c0_i32 = arith.constant 0 : i32
    %c0_i32_0 = arith.constant 0 : i32
    return %c0_i32, %arg0 : i32, i32
  }
}

</mosaic_0001>

<bundles_post_ra>
// kernel: tpu_custom_call.1
= control target key start
LH: loop header
LB: loop body
LE: loop exit
PB: predicated region body
PF: predicated region fallthrough
CT: control target
= control target key end

     0   :  { %7 = vsyncpa [#allocation3], 0  ;;  %s1001_s0 = inlined_call_operand.hbm [shape: f32[4,1000], index: 0, kind: input, shape index: {}]   ;;  %s1002_s1 = inlined_call_operand.hbm [shape: s32[1,1000], index: 1, kind: input, shape index: {}]   ;;  %s1003_s2 = inlined_call_operand.hbm [shape: f32[1,256], index: 2, kind: output, shape index: {}]  }
   0x1   :  { %9 = vsyncpa [#allocation3 + $0x1], 0 }
   0x2   :  { %10 = vsyncpa [#allocation6], 0 }
   0x3   :  { %12 = vsyncpa [#allocation6 + $0x1], 0 }
   0x4   :  { %13 = vsyncpa [#allocation4], 0 }
   0x5   :  { %15 = vsyncpa [#allocation4 + $0x1], 0  ;;  %s776_s9 = smov 0   ;;  %s778_s10 = smov 0  }
   0x6   :  { %s780_s11 = smov 0   ;;  %s782_s12 = smov 0  }
   0x7 LB: > { %s797_s13 = sadd.s32 4294967295, %s756_s12   ;;  %s547_s14 = sadd.s32 4294967294, %s756_s12   ;;  %s756_s12 = sphi %s782_s12, %s1022_s12   ;;  %s752_s11 = sphi %s780_s11, %s1021_s11   ;;  %s748_s10 = sphi %s778_s10, %s1020_s10   ;;  %s744_s9 = sphi %s776_s9, %s1019_s9  }
   0x8   : > { %s801_s15 = sadd.s32 1, %s756_s12   ;;  %s28_s16 = sadd.s32 1, %s752_s11 }
   0x9   : > { %s25_s17 = ssub.s32 %s756_s12, %s801_s15  ;;  %p35_p0 = scmp.ne.s32.totalorder %s752_s11, %s748_s10 }
   0xa   : > { %p26_p1 = scmp.eq.s32.totalorder %s25_s17, 0  ;;  %p36_p2 = scmp.eq.s32.totalorder %s756_s12, 0 }
   0xb   : > { %p41_p3 = scmp.ne.s32.totalorder %s748_s10, %s744_s9  ;;  %p42_p4 = scmp.eq.s32.totalorder %s797_s13, 0 }
   0xc   : > { %s813_s18 = scalar_select %p26_p1, %s752_s11, %s28_s16  }
   0xd   : > { %p815_p5 = por %p36_p2, %p35_p0  ;;  %p819_p6 = por %p42_p4, %p41_p3 }
   0xe   : > { %p91_p7 = scmp.eq.s32.totalorder %s797_s13, 1  ;;  %p97_p8 = scmp.eq.s32.totalorder %s547_s14, 1 }
   0xf   : > { %s1007_s20 = scalar_select %p819_p6, 1, 0 }
  0x10   : > { %p584_p10 = scmp.lt.s32.totalorder %s756_s12, 2  ;;  %p826_p11 = por %p91_p7, %p35_p0 }
  0x11   : > { %p830_p12 = por %p97_p8, %p41_p3  ;;  %s835_s23 = sand.u32 1, %s752_s11  }
  0x12   : > { %s1008_s21 = scalar_select %p826_p11, 1, 0 }
  0x13   : > { %s1009_s22 = scalar_select %p830_p12, 1, 0 }
  0x14   : > { %s563_s24 = sshll.u32 %s756_s12, 8  ;;  %s550_s25 = sshll.u32 %s835_s23, 4 }
  0x15   : > { %s842_s28 = scalar_lea.hbm %s1001_s0, %s563_s24  ;;  %s121_s29 = scalar_lea.vmem [#allocation2], %s550_s25 }
  0x16   : > { %s129_s30 = sshll.u32 %s121_s29, 4  ;;  %p846_p13 = pnand %p584_p10, %p815_p5  ;;  %s850_s30 = int_to_ptr.vmem [resolvable:$true] %s129_s30 }
  0x17   : > { %s118_s4 = scalar_lea.sflag [#allocation3], %s835_s23  ;;  %s632_s5 = scalar_lea.hbm %s842_s28, 256 }
  0x18   : > { %p633_p2 = scmp.ne.s32.totalorder %s842_s28, %s632_s5  ;;  %p634_p3 = pneg %p846_p13 }
  0x19   : > { %s637_s8 = scalar_lea.hbm %s1001_s0, 512  ;;  %p638_p5 = scmp.lt.s32.totalorder %s842_s28, %s1001_s0 }
  0x1a   : > { %p635_p4 = pnand %p634_p3, %p633_p2  ;;  %p639_p8 = scmp.lt.s32.totalorder %s637_s8, %s632_s5 }
  0x1c   : > { %p636_p7 = pneg %p635_p4  ;;  %p640_p10 = por %p639_p8, %p638_p5 }
  0x1e   : > { %p641_p9 = pnand %p640_p10, %p636_p7 }
  0x20   : > { %644 = shalt.err (!%p641_p9)
}
  0x21   : > { %s645_s17 = scalar_lea.vmem %s850_s30, 256  ;;  %s758_s19 = smov [#allocation2]  }
  0x22   : > { %p646_p0 = scmp.ne.s32.totalorder %s850_s30, %s645_s17  ;;  %s650_s24 = sshll.u32 %s758_s19, 4  ;;  %s651_s24 = int_to_ptr.vmem [resolvable:$false] %s650_s24 }
  0x23   : > { %s652_s25 = scalar_lea.vmem %s651_s24, 512  ;;  %p653_p1 = scmp.lt.s32.totalorder %s850_s30, %s651_s24 }
  0x24   : > { %p648_p2 = pnand %p646_p0, %p634_p3  ;;  %p654_p12 = scmp.lt.s32.totalorder %s652_s25, %s645_s17 }
  0x26   : > { %p649_p4 = pneg %p648_p2  ;;  %p655_p11 = por %p654_p12, %p653_p1 }
  0x28   : > { %p656_p5 = pnand %p655_p11, %p649_p4 }
  0x2a   : > { %659 = shalt.err (!%p656_p5)
}
  0x2b   : > { %576 = dma.hbm_to_vmem [thread:$0]  (!%p846_p13), %s842_s28, 256, %s850_s30, %s118_s4  }
  0x2c   : > { %p1011_p9 = scmp.lt.s32.totalorder %s756_s12, 3  ;;  %p1012_p0 = scmp.ge.s32.totalorder %s756_s12, 1 }
  0x2d   : > { %s553_s27 = sshll.u32 %s835_s23, 2  ;;  %s564_s29 = sshll.u32 %s756_s12, 6 }
  0x2e   : > { %p883_p7 = pnand %p1012_p0, %p1011_p9  ;;  %s892_s7 = scalar_lea.hbm %s1002_s1, %s564_s29 }
  0x2f   : > { %s140_s8 = scalar_lea.vmem [#allocation5], %s553_s27  ;;  %s137_s28 = scalar_lea.sflag [#allocation6], %s835_s23 }
  0x30   : > { %s1013_s26 = scalar_select %p883_p7, 1, 0 }
  0x31   : > { %s148_s14 = sshll.u32 %s140_s8, 4  ;;  %s660_s30 = scalar_lea.hbm %s892_s7, 64  ;;  %s149_s14 = int_to_ptr.vmem [resolvable:$true] %s148_s14 }
  0x32   : > { %p661_p11 = scmp.ne.s32.totalorder %s892_s7, %s660_s30  ;;  %s665_s17 = scalar_lea.hbm %s1002_s1, 128 }
  0x33   : > { %p666_p8 = scmp.lt.s32.totalorder %s892_s7, %s1002_s1  ;;  %p667_p10 = scmp.lt.s32.totalorder %s665_s17, %s660_s30 }
  0x34   : > { %p663_p12 = pnand %p661_p11, %p634_p3 }
  0x35   : > { %p668_p2 = por %p667_p10, %p666_p8 }
  0x36   : > { %p664_p1 = pneg %p663_p12 }
  0x38   : > { %p669_p4 = pnand %p668_p2, %p664_p1 }
  0x3a   : > { %672 = shalt.err (!%p669_p4)
}
  0x3b   : > { %s673_s25 = scalar_lea.vmem %s149_s14, 64  ;;  %s759_s23 = smov [#allocation5]  }
  0x3c   : > { %p674_p5 = scmp.ne.s32.totalorder %s149_s14, %s673_s25  ;;  %s678_s27 = sshll.u32 %s759_s23, 4  ;;  %s679_s27 = int_to_ptr.vmem [resolvable:$false] %s678_s27 }
  0x3d   : > { %s680_s29 = scalar_lea.vmem %s679_s27, 128  ;;  %p681_p11 = scmp.lt.s32.totalorder %s149_s14, %s679_s27 }
  0x3e   : > { %p676_p9 = pnand %p674_p5, %p634_p3  ;;  %p682_p12 = scmp.lt.s32.totalorder %s680_s29, %s673_s25 }
  0x40   : > { %p677_p0 = pneg %p676_p9  ;;  %p683_p6 = por %p682_p12, %p681_p11 }
  0x42   : > { %p684_p7 = pnand %p683_p6, %p677_p0 }
  0x44   : > { %687 = shalt.err (!%p684_p7)
}
  0x45   : > { %579 = dma.hbm_to_vmem [thread:$0]  (!%p846_p13), %s892_s7, 64, %s149_s14, %s137_s28  }
  0x46   : > { %p1014_p1 = scmp.ne.s32.totalorder %s1013_s26, 0 }
  0x47   : > { %s916_s5 = sand.u32 (!%p1014_p1), 1, %s748_s10   ;;  %p1015_p3 = scmp.ne.s32.totalorder (!%p1014_p1), %s1007_s20, 0 }
  0x48   : > { %157 = sbr.rel (%p1014_p1) target bundleno = 379 (0x17b), region = 28  ;;  %s557_s6 = sshll.u32 (!%p1014_p1), %s916_s5, 4 }
  0x49   : > { %s160_s8 = scalar_lea.sflag (!%p1014_p1), [#allocation3], %s916_s5  ;;  %s163_s30 = scalar_lea.vmem (!%p1014_p1), [#allocation2], %s557_s6 }
  0x4d   : > { %731 = dma.done.wait (%p1015_p3), %s160_s8, 256  }
  0x4e   : > { %733 = vsyncadd (%p1015_p3), %s160_s8, 4294967040  ;;  %s558_s3 = sshll.u32 %s916_s5, 2  ;;  %s169_s26 = scalar_lea.sflag [#allocation6], %s916_s5 }
  0x4f   : > { %s926_s7 = scalar_lea.vmem [#allocation5], %s558_s3 }
  0x50   : > { %735 = dma.done.wait (%p1015_p3), %s169_s26, 64  }
  0x51   : > { %737 = vsyncadd (%p1015_p3), %s169_s26, 4294967232  ;;  %vm208_vm0 = vcmask 1043456   ;;  %v199_v0 = vld [vmem:[%s163_s30] sm:$0xff]  ;;  %v200_v1 = vld [vmem:[%s163_s30 + $0x8] sm:$0xff]  ;;  %v335_v34 = vlaneseq  ;;  %s559_s20 = sshll.u32 %s797_s13, 9  ;;  %vm424_vm7 = vcmask 1040384  }
  0x52   : > { %v204_v2 = vcombine.high %v199_v0, %v199_v0  ;;  %v205_v3 = vcombine.high %v200_v1, %v200_v1  ;;  %v209_v4 = vsel %vm208_vm0, %v199_v0, -inf  ;;  %v223_v5 = vsel %vm208_vm0, %v200_v1, -inf  ;;  %v201_v41 = vld [vmem:[%s926_s7] sm:$0xf]  ;;  %s560_s14 = sshll.u32 %s797_s13, 4  ;;  %s196_s28 = scalar_lea.vmem [#allocation7], %s916_s5 }
  0x53   : > { %v210_v6 = vrot.slane %v209_v4, 4  ;;  %v224_v7 = vrot.slane %v223_v5, 4  ;;  %v336_v39 = vshrl.u32 %v335_v34, 7  ;;  %s458_s4 = sshll.u32 %s196_s28, 4  ;;  %s964_s24 = scalar_lea.hbm %s1003_s2, %s560_s14  ;;  %s459_s4 = int_to_ptr.vmem [resolvable:$true] %s458_s4 }
  0x54   : > { %v216_v8 = vsel %vm208_vm0, %v204_v2, -inf  ;;  %v230_v9 = vsel %vm208_vm0, %v205_v3, -inf  ;;  %s446_s25 = scalar_lea.sflag [#allocation4], %s916_s5  ;;  %s688_s23 = scalar_lea.vmem %s459_s4, 16 }
  0x55   : > { %v211_v10 = vmax.f32 %v209_v4, %v210_v6  ;;  %v217_v11 = vrot.slane %v216_v8, 4  ;;  %v225_v12 = vmax.f32 %v223_v5, %v224_v7  ;;  %v231_v13 = vrot.slane %v230_v9, 4  ;;  %p689_p6 = scmp.ne.s32.totalorder %s459_s4, %s688_s23  ;;  %p1016_p13 = scmp.ne.s32.totalorder %s1008_s21, 0 }
  0x56   : > { %v339_v40 = vsub.s32 0, %v336_v39  ;;  %v347_v42 = vsub.s32 2, %v336_v39  ;;  %v343_v43 = vsub.s32 1, %v336_v39  ;;  %v351_v44 = vsub.s32 3, %v336_v39  ;;  %s760_s13 = smov [#allocation7]  }
  0x57   : > { %v212_v14 = vrot.slane %v211_v10, 2  ;;  %v218_v15 = vmax.f32 %v216_v8, %v217_v11  ;;  %v226_v16 = vrot.slane %v225_v12, 2  ;;  %v232_v17 = vmax.f32 %v230_v9, %v231_v13  ;;  %p690_p7 = pnand %p689_p6, %p1016_p13  ;;  %s692_s27 = sshll.u32 %s760_s13, 4  ;;  %s693_s27 = int_to_ptr.vmem [resolvable:$false] %s692_s27 }
  0x58   : > { %v340_v45 = vrot.slane %v201_v41, %v339_v40  ;;  %v348_v46 = vrot.slane %v201_v41, %v347_v42  ;;  %v344_v47 = vrot.slane %v201_v41, %v343_v43  ;;  %v352_v48 = vrot.slane %v201_v41, %v351_v44  ;;  %s694_s29 = scalar_lea.vmem %s693_s27, 32  ;;  %p695_p10 = scmp.lt.s32.totalorder %s459_s4, %s693_s27 }
  0x59   : > { %v213_v18 = vmax.f32 %v211_v10, %v212_v14  ;;  %v219_v19 = vrot.slane %v218_v15, 2  ;;  %v227_v20 = vmax.f32 %v225_v12, %v226_v16  ;;  %v233_v21 = vrot.slane %v232_v17, 2  ;;  %p691_p8 = pneg %p690_p7  ;;  %p696_p2 = scmp.lt.s32.totalorder %s694_s29, %s688_s23 }
  0x5a   : > { %vm353_vm1 = vcmp.eq.s32.totalorder %v336_v39, %v340_v45  ;;  %vm355_vm2 = vcmp.eq.s32.totalorder %v336_v39, %v348_v46  ;;  %vm354_vm3 = vcmp.eq.s32.totalorder %v336_v39, %v344_v47  ;;  %vm356_vm4 = vcmp.eq.s32.totalorder %v336_v39, %v352_v48 }
  0x5b   : > { %v214_v22 = vrot.slane %v213_v18, 1  ;;  %v220_v23 = vmax.f32 %v218_v15, %v219_v19  ;;  %v228_v24 = vrot.slane %v227_v20, 1  ;;  %v234_v25 = vmax.f32 %v232_v17, %v233_v21  ;;  %p697_p4 = por %p696_p2, %p695_p10 }
  0x5d   : > { %v215_v26 = vmax.f32 %v213_v18, %v214_v22  ;;  %v221_v27 = vrot.slane %v220_v23, 1  ;;  %v229_v28 = vmax.f32 %v227_v20, %v228_v24  ;;  %v235_v29 = vrot.slane %v234_v25, 1  ;;  %p698_p5 = pnand %p697_p4, %p691_p8 }
  0x5f   : > { %v222_v30 = vmax.f32 %v220_v23, %v221_v27  ;;  %v236_v31 = vmax.f32 %v234_v25, %v235_v29 }
  0x61   : > { %v241_v32 = vcombine.low %v215_v26, %v222_v30  ;;  %v242_v33 = vcombine.low %v229_v28, %v236_v31 }
  0x63   : > { %v245_v35 = vsub.f32 %v199_v0, %v241_v32  ;;  %v246_v36 = vsub.f32 %v200_v1, %v242_v33 }
  0x65   : > { %v247_v37 = vmul.f32 1.442695, %v245_v35  ;;  %v249_v38 = vmul.f32 1.442695, %v246_v36  ;;  %v295_v49 = vcombine.high %v245_v35, %v245_v35  ;;  %v296_v50 = vcombine.high %v246_v36, %v246_v36 }
  0x66   : > { %v299_v52 = vsel %vm208_vm0, %v245_v35, 0.0  ;;  %v357_v53 = vsel %vm353_vm1, %v245_v35, 0.0  ;;  %v313_v57 = vsel %vm208_vm0, %v246_v36, 0.0  ;;  %v359_v58 = vsel %vm355_vm2, %v246_v36, 0.0 }
  0x67   : > { %620 = vpow2.f32 %v247_v37  ;;  %v358_v62 = vsel %vm354_vm3, %v295_v49, 0.0  ;;  %v360_v1 = vsel %vm356_vm4, %v296_v50, 0.0  ;;  %v361_v2 = vsel %vm208_vm0, %v357_v53, 0.0 }
  0x68   : > { %622 = vpow2.f32 %v249_v38  ;;  %v375_v6 = vsel %vm208_vm0, %v359_v58, 0.0  ;;  %v300_v9 = vrot.slane %v299_v52, 4  ;;  %v368_v10 = vsel %vm208_vm0, %v358_v62, 0.0 }
  0x69   : > { %v362_v13 = vrot.slane %v361_v2, 4  ;;  %v382_v14 = vsel %vm208_vm0, %v360_v1, 0.0  ;;  %v306_v17 = vsel %vm208_vm0, %v295_v49, 0.0  ;;  %v376_v18 = vrot.slane %v375_v6, 4 }
  0x6a   : > { %v320_v21 = vsel %vm208_vm0, %v296_v50, 0.0  ;;  %v369_v22 = vrot.slane %v368_v10, 4  ;;  %v314_v25 = vrot.slane %v313_v57, 4  ;;  %v383_v26 = vrot.slane %v382_v14, 4 }
  0x6b   : > { %v307_v29 = vrot.slane %v306_v17, 4  ;;  %v363_v30 = vadd.f32 %v362_v13, %v361_v2  ;;  %v321_v33 = vrot.slane %v320_v21, 4  ;;  %v377_v35 = vadd.f32 %v376_v18, %v375_v6 }
  0x6c   : > { %v301_v38 = vadd.f32 %v300_v9, %v299_v52  ;;  %v370_v39 = vadd.f32 %v369_v22, %v368_v10  ;;  %v315_v42 = vadd.f32 %v314_v25, %v313_v57  ;;  %v384_v43 = vadd.f32 %v383_v26, %v382_v14 }
  0x6d   : > { %v308_v45 = vadd.f32 %v307_v29, %v306_v17  ;;  %v364_v46 = vrot.slane %v363_v30, 2  ;;  %v322_v48 = vadd.f32 %v321_v33, %v320_v21  ;;  %v378_v49 = vrot.slane %v377_v35, 2 }
  0x6e   : > { %v302_v50 = vrot.slane %v301_v38, 2  ;;  %v316_v53 = vrot.slane %v315_v42, 2  ;;  %v385_v52 = vrot.slane %v384_v43, 2  ;;  %v411_v6 = vstv %s559_s20 }
  0x6f   : > { %v379_v57 = vadd.f32 %v378_v49, %v377_v35 }
  0x70   : > { %v303_v58 = vadd.f32 %v302_v50, %v301_v38  ;;  %v386_v62 = vadd.f32 %v385_v52, %v384_v43 }
  0x71   : > { %v380_v2 = vrot.slane %v379_v57, 1 }
  0x73   : > { %v381_v13 = vadd.f32 %v380_v2, %v379_v57 }
  0x74   : > { %v621_v51 = vpop.eup %620 }
  0x75   : > { %v623_v54 = vpop.eup %622  ;;  %v253_v55 = vcombine.high %v621_v51, %v621_v51  ;;  %v257_v56 = vsel %vm208_vm0, %v621_v51, 0.0  ;;  %v371_v51 = vrot.slane %v370_v39, 2 }
  0x76   : > { %v254_v59 = vcombine.high %v623_v54, %v623_v54  ;;  %v258_v60 = vrot.slane %v257_v56, 4  ;;  %v271_v61 = vsel %vm208_vm0, %v623_v54, 0.0  ;;  %v309_v54 = vrot.slane %v308_v45, 2 }
  0x77   : > { %v264_v63 = vsel %vm208_vm0, %v253_v55, 0.0  ;;  %v272_v0 = vrot.slane %v271_v61, 4  ;;  %v365_v55 = vadd.f32 %v364_v46, %v363_v30 }
  0x78   : > { %v259_v3 = vadd.f32 %v258_v60, %v257_v56  ;;  %v265_v4 = vrot.slane %v264_v63, 4  ;;  %v278_v5 = vsel %vm208_vm0, %v254_v59, 0.0  ;;  %v323_v56 = vrot.slane %v322_v48, 2 }
  0x79   : > { %v273_v7 = vadd.f32 %v272_v0, %v271_v61  ;;  %v279_v8 = vrot.slane %v278_v5, 4  ;;  %v372_v59 = vadd.f32 %v371_v51, %v370_v39  ;;  %v951_v60 = vand.u32 127, %v335_v34 }
  0x7a   : > { %v260_v11 = vrot.slane %v259_v3, 2  ;;  %v266_v12 = vadd.f32 %v265_v4, %v264_v63  ;;  %v317_v61 = vadd.f32 %v316_v53, %v315_v42  ;;  %v310_v63 = vadd.f32 %v309_v54, %v308_v45 }
  0x7b   : > { %v274_v15 = vrot.slane %v273_v7, 2  ;;  %v280_v16 = vadd.f32 %v279_v8, %v278_v5  ;;  %v366_v0 = vrot.slane %v365_v55, 1  ;;  %v324_v1 = vadd.f32 %v323_v56, %v322_v48 }
  0x7c   : > { %v261_v19 = vadd.f32 %v260_v11, %v259_v3  ;;  %v267_v20 = vrot.slane %v266_v12, 2  ;;  %v304_v3 = vrot.slane %v303_v58, 1  ;;  %v373_v4 = vrot.slane %v372_v59, 1 }
  0x7d   : > { %v275_v23 = vadd.f32 %v274_v15, %v273_v7  ;;  %v281_v24 = vrot.slane %v280_v16, 2  ;;  %v408_v5 = vadd.s32 128, %v951_v60  ;;  %v318_v7 = vrot.slane %v317_v61, 1 }
  0x7e   : > { %v262_v27 = vrot.slane %v261_v19, 1  ;;  %v268_v28 = vadd.f32 %v267_v20, %v266_v12  ;;  %v387_v8 = vrot.slane %v386_v62, 1  ;;  %v409_v9 = vadd.s32 256, %v951_v60 }
  0x7f   : > { %v276_v31 = vrot.slane %v275_v23, 1  ;;  %v282_v32 = vadd.f32 %v281_v24, %v280_v16  ;;  %v311_v10 = vrot.slane %v310_v63, 1  ;;  %v367_v11 = vadd.f32 %v366_v0, %v365_v55 }
  0x80   : > { %v263_v36 = vadd.f32 %v262_v27, %v261_v19  ;;  %v269_v37 = vrot.slane %v268_v28, 1  ;;  %v325_v12 = vrot.slane %v324_v1, 1  ;;  %v410_v14 = vadd.s32 384, %v951_v60 }
  0x81   : > { %v277_v40 = vadd.f32 %v276_v31, %v275_v23  ;;  %v283_v41 = vrot.slane %v282_v32, 1  ;;  %v412_v15 = vadd.s32 %v411_v6, %v951_v60  ;;  %v305_v18 = vadd.f32 %v304_v3, %v303_v58 }
  0x82   : > { %v270_v44 = vadd.f32 %v269_v37, %v268_v28  ;;  %624 = vlog2.f32 %v263_v36  ;;  %v374_v19 = vadd.f32 %v373_v4, %v372_v59  ;;  %v413_v20 = vadd.s32 %v411_v6, %v408_v5 }
  0x83   : > { %v284_v47 = vadd.f32 %v283_v41, %v282_v32  ;;  %626 = vlog2.f32 %v277_v40  ;;  %v319_v23 = vadd.f32 %v318_v7, %v317_v61  ;;  %v388_v24 = vadd.f32 %v387_v8, %v386_v62 }
  0x84   : > { %628 = vlog2.f32 %v270_v44  ;;  %v414_v25 = vadd.s32 %v411_v6, %v409_v9  ;;  %v312_v28 = vadd.f32 %v311_v10, %v310_v63  ;;  %v326_v32 = vadd.f32 %v325_v12, %v324_v1 }
  0x85   : > { %630 = vlog2.f32 %v284_v47  ;;  %v415_v47 = vadd.s32 %v411_v6, %v410_v14  ;;  %vm416_vm5 = vcmp.lt.s32.totalorder %v412_v15, 1000  ;;  %vm417_vm8 = vcmp.lt.s32.totalorder %v413_v20, 1000 }
  0x86   : > { %vm418_vm6 = vcmp.lt.s32.totalorder %v414_v25, 1000  ;;  %vm441_vm10 = vcmp.eq.s32.totalorder %v951_v60, 0 }
  0x87   : > { %vm419_vm9 = vcmp.lt.s32.totalorder %v415_v47, 1000 }
  0x8f   : > { %v625_v34 = vpop.eup %624 }
  0x90   : > { %v627_v16 = vpop.eup %626  ;;  %v286_v17 = vmul.f32 0.6931472, %v625_v34 }
  0x91   : > { %v629_v21 = vpop.eup %628  ;;  %v290_v22 = vmul.f32 0.6931472, %v627_v16 }
  0x92   : > { %v631_v26 = vpop.eup %630  ;;  %v288_v27 = vmul.f32 0.6931472, %v629_v21  ;;  %v327_v29 = vmul.f32 4.0, %v286_v17  ;;  %v389_v30 = vsub.f32 %v367_v11, %v286_v17 }
  0x93   : > { %v292_v31 = vmul.f32 0.6931472, %v631_v26  ;;  %v329_v33 = vmul.f32 4.0, %v290_v22  ;;  %v391_v35 = vsub.f32 %v381_v13, %v290_v22 }
  0x94   : > { %v328_v36 = vmul.f32 4.0, %v288_v27  ;;  %v331_v37 = vsub.f32 %v305_v18, %v327_v29  ;;  %v390_v38 = vsub.f32 %v374_v19, %v288_v27  ;;  %v393_v39 = vmul.f32 -0.9, %v389_v30 }
  0x95   : > { %v330_v40 = vmul.f32 4.0, %v292_v31  ;;  %v333_v41 = vsub.f32 %v319_v23, %v329_v33  ;;  %v392_v42 = vsub.f32 %v388_v24, %v292_v31  ;;  %v395_v43 = vmul.f32 -0.9, %v391_v35 }
  0x96   : > { %v332_v44 = vsub.f32 %v312_v28, %v328_v36  ;;  %v394_v45 = vmul.f32 -0.9, %v390_v38  ;;  %v397_v46 = vmul.f32 0.025, %v331_v37 }
  0x97   : > { %v334_v48 = vsub.f32 %v326_v32, %v330_v40  ;;  %v396_v49 = vmul.f32 -0.9, %v392_v42  ;;  %v399_v50 = vmul.f32 0.025, %v333_v41 }
  0x98   : > { %v398_v51 = vmul.f32 0.025, %v332_v44  ;;  %v401_v53 = vsub.f32 %v393_v39, %v397_v46 }
  0x99   : > { %v400_v52 = vmul.f32 0.025, %v334_v48  ;;  %v403_v54 = vsub.f32 %v395_v43, %v399_v50 }
  0x9a   : > { %v402_v55 = vsub.f32 %v394_v45, %v398_v51  ;;  %v420_v56 = vsel %vm416_vm5, %v401_v53, 0.0 }
  0x9b   : > { %v404_v57 = vsub.f32 %v396_v49, %v400_v52  ;;  %v422_v58 = vsel %vm418_vm6, %v403_v54, 0.0  ;;  %v425_v59 = vsel %vm424_vm7, %v420_v56, 0.0 }
  0x9c   : > { %v421_v61 = vsel %vm417_vm8, %v402_v55, 0.0  ;;  %v428_v0 = vsel %vm424_vm7, %v422_v58, 0.0 }
  0x9d   : > { %v423_v62 = vsel %vm419_vm9, %v404_v57, 0.0  ;;  %v426_v63 = vsel %vm424_vm7, %v421_v61, 0.0 }
  0x9e   : > { %v427_v1 = vadd.f32 %v426_v63, %v425_v59  ;;  %v430_v2 = vsel %vm424_vm7, %v423_v62, 0.0 }
  0xa0   : > { %v429_v3 = vadd.f32 %v428_v0, %v427_v1 }
  0xa2   : > { %v431_v4 = vadd.f32 %v430_v2, %v429_v3 }
  0xa4   : > { %432 = vadd.xlane.f32.xlu0 %v431_v4 }
 0x12d   : > { %v433_v5 = vpop.xlane.xlu0 %432 }
 0x12e   : > { %v434_v6 = vrot.slane %v433_v5, 4 }
 0x130   : > { %v435_v7 = vadd.f32 %v434_v6, %v433_v5 }
 0x132   : > { %v436_v8 = vrot.slane %v435_v7, 2 }
 0x134   : > { %v437_v9 = vadd.f32 %v436_v8, %v435_v7 }
 0x136   : > { %v438_v10 = vrot.slane %v437_v9, 1 }
 0x138   : > { %v439_v11 = vadd.f32 %v438_v10, %v437_v9 }
 0x13a   : > { %565 = vpush %v439_v11 }
 0x16b   : > { %s566_s16 = spop %565 }
 0x16c   : > { %v442_v34 = vstv %s566_s16 }
 0x16d   : > { %v443_v12 = vsel %vm441_vm10, %v442_v34, 0.0 }
 0x16e   : > { %444 = vst [vmem:[%s196_s28] sm:$0x1] %v443_v12 }
 0x16f   : > { %701 = shalt.err (!%p698_p5)
}
 0x170   : > { %s702_s6 = scalar_lea.hbm %s964_s24, 16  ;;  %s706_s30 = scalar_lea.hbm %s1003_s2, 32 }
 0x171   : > { %p703_p9 = scmp.ne.s32.totalorder %s964_s24, %s702_s6  ;;  %p707_p12 = scmp.lt.s32.totalorder %s964_s24, %s1003_s2 }
 0x172   : > { %p708_p1 = scmp.lt.s32.totalorder %s706_s30, %s702_s6 }
 0x173   : > { %p704_p0 = pnand %p703_p9, %p1016_p13 }
 0x174   : > { %p709_p3 = por %p708_p1, %p707_p12 }
 0x175   : > { %p705_p11 = pneg %p704_p0 }
 0x177   : > { %p710_p6 = pnand %p709_p3, %p705_p11 }
 0x179   : > { %713 = shalt.err (!%p710_p6)
}
 0x17a   : > { %571 = dma.vmem_to_hbm [thread:$0]  (%p1016_p13), %s459_s4, 16, %s964_s24, %s446_s25  }
 0x17b PF: > { %s470_s7 = sand.u32 1, %s744_s9   ;;  %p1017_p7 = scmp.ne.s32.totalorder %s1009_s22, 0 }
 0x17c   : > { %p1018_p8 = scmp.ge.s32.totalorder %s756_s12, 2  ;;  %s471_s20 = scalar_lea.sflag [#allocation4], %s470_s7 }
 0x17e   : > { %p581_p10 = pnand %p1018_p8, %p1017_p7 }
 0x180   : > { %p582_p2 = pneg %p581_p10 }
 0x182   : > { %739 = dma.done.wait (%p582_p2), %s471_s20, 16  }
 0x183   : > { %741 = vsyncadd (%p582_p2), %s471_s20, 4294967280  ;;  %p18_p4 = scmp.ge.s32.totalorder %s801_s15, 4   ;;  %s1019_s9 = smov %s748_s10 }
 0x184   : > { %s1020_s10 = smov %s752_s11  ;;  %s1021_s11 = smov %s813_s18 }
 0x185   : > { %s1022_s12 = smov %s801_s15  ;;  %20 = sbr.rel (!%p18_p4) target bundleno = 7 (0x7), region = 86 }
 0x18a   :  { %475 = vsyncpa [#allocation3], 1 }
 0x18b   :  { %477 = vsyncpa [#allocation3 + $0x1], 1 }
 0x18c   :  { %478 = vsyncpa [#allocation6], 1 }
 0x18d   :  { %480 = vsyncpa [#allocation6 + $0x1], 1 }
 0x18e   :  { %481 = vsyncpa [#allocation4], 1 }
 0x18f   :  { %483 = vsyncpa [#allocation4 + $0x1], 1 }

</bundles_post_ra>
